<compile_context>
chip_gen: v6e
topology: v6e:2x2x1
jax: 0.10.0
libtpu: 0.0.40
codegen_flags: <defaults>
</compile_context>

<pallas_src>
import functools

import jax
import jax.numpy as jnp
from jax.experimental import pallas as pl
from jax.experimental.pallas import tpu as pltpu

# ---- "config" values (YOLO-style), kept small & deterministic ----
S = 4                 # grid cells per side
B = 2                 # boxes per cell
C = 4                 # number of classes
D = C + 5 * B         # features per cell = 14
LAMBDA_COORD = 5      # int, as in the module signature
LAMBDA_NOOBJ = 0.5

# The fused weighted reduction below is exact only because D == C + 10
# (no dead "else 0" feature columns).  Keep this assert if D ever changes.
assert D == C + 10


def _loss_kernel(yp_ref, yt_ref, out_ref, *, lambda_coord, lambda_noobj, c_cls):
    # Blocks are (TB, D, SS): features on the sublane axis, cells on lanes.
    yp = yp_ref[...]
    yt = yt_ref[...]
    d = yp.shape[1]

    diff = yt - yp
    sq = diff * diff

    # Single fused weighted reduction over the feature axis:
    #   weight[c < C]          = 1 + lambda_noobj
    #   weight[C <= c < C+10]  = lambda_coord
    feat_idx = jax.lax.broadcasted_iota(jnp.int32, (1, d, 1), 1)
    w = jnp.where(feat_idx < c_cls,
                  jnp.float32(1.0 + lambda_noobj),
                  jnp.float32(lambda_coord))
    per_cell = jnp.sum(sq * w, axis=1, keepdims=True)        # (TB, 1, SS)

    # "IoU" term -- exact replication of `calcualteC` (including its odd
    # min/max choice and intersection formula); only box 0 (rows C..C+3).
    # All slices here are cheap sublane slices; the math is lane-parallel
    # across the SS cells.
    pxy = yp[:, c_cls:c_cls + 2, :]                           # (TB, 2, SS) x, y
    pwh = yp[:, c_cls + 2:c_cls + 4, :]                       # (TB, 2, SS) w, h
    gxy = yt[:, c_cls:c_cls + 2, :]
    gwh = yt[:, c_cls + 2:c_cls + 4, :]

    p_tl = pxy - 0.5 * pwh                                    # rows: (x1, y1)
    p_br = pxy + 0.5 * pwh                                    # rows: (x2, y2)
    g_tl = gxy - 0.5 * gwh
    g_br = gxy + 0.5 * gwh

    mx_tl = jnp.maximum(g_tl, p_tl)
    mn_tl = jnp.minimum(g_tl, p_tl)
    mx_br = jnp.maximum(g_br, p_br)
    mn_br = jnp.minimum(g_br, p_br)

    tl_x = mx_tl[:, 0:1, :]                                   # max of x1's
    tl_y = mn_tl[:, 1:2, :]                                   # min of y1's
    br_x = mx_br[:, 0:1, :]                                   # max of x2's
    br_y = mn_br[:, 1:2, :]                                   # min of y2's

    p_area = pwh[:, 0:1, :] * pwh[:, 1:2, :]
    g_area = gwh[:, 0:1, :] * gwh[:, 1:2, :]

    inter = (br_x - tl_x) * (tl_y - br_y)                     # (TB, 1, SS)
    union = p_area + g_area - inter
    iou = inter / union          # true divide: keeps the 1e-5 tolerance

    # One lane reduce per sample -> (TB, 1) per-sample losses.
    out_ref[...] = jnp.sum(per_cell + iou, axis=2)


def yolo_loss_batched(y_pred, y, *, lambda_coord=LAMBDA_COORD,
                      lambda_noobj=LAMBDA_NOOBJ, block_b=8):
    """Per-sample YOLO-style loss for a batch of (S, S, D) samples.

    y_pred, y: (NB, S, S, D) float32.  Returns (NB,) float32 losses.
    """
    nb, s1, s2, d = y_pred.shape
    assert (s1, s2, d) == (S, S, D)
    ss = s1 * s2

    # Layout plumbing only: features -> sublanes, cells -> lanes.
    yp = jnp.swapaxes(y_pred.reshape(nb, ss, d), 1, 2)        # (NB, D, SS)
    yt = jnp.swapaxes(y.reshape(nb, ss, d), 1, 2)

    # Batch tile: 8 samples per grid step when possible (keeps the output
    # block sublane-aligned); otherwise the whole batch in one step.
    tb = block_b if (nb % block_b == 0) else nb
    grid = (nb // tb,)

    kernel = functools.partial(
        _loss_kernel,
        lambda_coord=lambda_coord,
        lambda_noobj=lambda_noobj,
        c_cls=C,
    )

    flops = int(nb * 1500)                     # ~per-sample VPU op count
    bytes_accessed = int(nb * (2 * ss * d * 4 + 4))

    out = pl.pallas_call(
        kernel,
        out_shape=jax.ShapeDtypeStruct((nb, 1), jnp.float32),
        grid_spec=pltpu.PrefetchScalarGridSpec(
            num_scalar_prefetch=0,
            grid=grid,
            in_specs=[
                pl.BlockSpec((tb, d, ss), lambda i: (i, 0, 0)),
                pl.BlockSpec((tb, d, ss), lambda i: (i, 0, 0)),
            ],
            out_specs=pl.BlockSpec((tb, 1), lambda i: (i, 0)),
        ),
        compiler_params=pltpu.CompilerParams(
            dimension_semantics=("parallel",)),
        cost_estimate=pl.CostEstimate(
            flops=flops, transcendentals=int(nb * ss),
            bytes_accessed=bytes_accessed),
    )(yp, yt)
    return out[:, 0]


def yolo_loss_pallas(y_pred, y, *, lambda_coord=LAMBDA_COORD,
                     lambda_noobj=LAMBDA_NOOBJ):
    """Single-sample forward, matching the PyTorch module's signature."""
    return yolo_loss_batched(y_pred[None], y[None],
                             lambda_coord=lambda_coord,
                             lambda_noobj=lambda_noobj)[0]


def yolo_loss_reference(y_pred, y, *, lambda_coord=LAMBDA_COORD,
                        lambda_noobj=LAMBDA_NOOBJ):
    """Pure-JAX mirror of the intended PyTorch forward (batched)."""
    yp = y_pred.reshape(-1, S * S, D).astype(jnp.float32)
    yt = y.reshape(-1, S * S, D).astype(jnp.float32)
    sq = (yt - yp) ** 2
    cls_term = (1.0 + lambda_noobj) * jnp.sum(sq[..., :C], axis=(1, 2))
    coord_term = lambda_coord * jnp.sum(sq[..., C:C + 10], axis=(1, 2))

    def corners(t):
        x, yy, w, h = t[..., C], t[..., C + 1], t[..., C + 2], t[..., C + 3]
        return x - w / 2, yy - h / 2, x + w / 2, yy + h / 2, w * h

    px1, py1, px2, py2, pa = corners(yp)
    gx1, gy1, gx2, gy2, ga = corners(yt)
    tlx = jnp.maximum(gx1, px1)
    tly = jnp.minimum(gy1, py1)
    brx = jnp.maximum(gx2, px2)
    bry = jnp.minimum(gy2, py2)
    inter = (brx - tlx) * (tly - bry)
    union = pa + ga - inter
    return cls_term + coord_term + jnp.sum(inter / union, axis=1)


if __name__ == "__main__":
    key = jax.random.PRNGKey(0)
    k1, k2, k3, k4 = jax.random.split(key, 4)

    # keep coords/sizes positive & O(1) so the IoU denominator is well behaved
    y_pred = jax.random.uniform(k1, (S, S, D), jnp.float32, 0.1, 1.0)
    y_true = jax.random.uniform(k2, (S, S, D), jnp.float32, 0.1, 1.0)

    # Single-sample forward (matches the module's semantics).
    loss = yolo_loss_pallas(y_pred, y_true)
    jax.block_until_ready(loss)
    ref = yolo_loss_reference(y_pred[None], y_true[None])[0]
    assert jnp.allclose(loss, ref, rtol=1e-5, atol=1e-5), (loss, ref)

    # Batched path: 16 samples, 8 per grid step, batch axis "parallel".
    nb = 16
    ypb = jax.random.uniform(k3, (nb, S, S, D), jnp.float32, 0.1, 1.0)
    ytb = jax.random.uniform(k4, (nb, S, S, D), jnp.float32, 0.1, 1.0)
    lossb = yolo_loss_batched(ypb, ytb)
    jax.block_until_ready(lossb)
    refb = yolo_loss_reference(ypb, ytb)
    assert jnp.allclose(lossb, refb, rtol=1e-5, atol=1e-5), (lossb, refb)

    print("KERNEL_OK")
</pallas_src>

<mosaic_0001>
module attributes {stable_mosaic.version = 11 : i64} {
  func.func @_loss_kernel(%arg0: i32, %arg1: memref<1x14x16xf32, #tpu.memory_space<vmem>>, %arg2: memref<1x14x16xf32, #tpu.memory_space<vmem>>, %arg3: memref<1x1xf32, #tpu.memory_space<vmem>>) attributes {dimension_semantics = [#tpu.dimension_semantics<parallel>], iteration_bounds = array<i64: 1>, scalar_prefetch = 0 : i64, scratch_operands = 0 : i64, tpu.core_type = #tpu.core_type<tc>, window_params = [{transform_indices = @transform_0, window_bounds = array<i64: 1, 14, 16>}, {transform_indices = @transform_1, window_bounds = array<i64: 1, 14, 16>}, {transform_indices = @transform_2, window_bounds = array<i64: 1, 1>}]} {
    %c0 = arith.constant 0 : index
    %c0_0 = arith.constant 0 : index
    %c0_1 = arith.constant 0 : index
    %0 = vector.load %arg1[%c0, %c0_0, %c0_1] : memref<1x14x16xf32, #tpu.memory_space<vmem>>, vector<1x14x16xf32>
    %c0_2 = arith.constant 0 : index
    %c0_3 = arith.constant 0 : index
    %c0_4 = arith.constant 0 : index
    %1 = vector.load %arg2[%c0_2, %c0_3, %c0_4] : memref<1x14x16xf32, #tpu.memory_space<vmem>>, vector<1x14x16xf32>
    %2 = arith.subf %1, %0 : vector<1x14x16xf32>
    %3 = arith.mulf %2, %2 : vector<1x14x16xf32>
    %4 = tpu.iota {dimensions = array<i32: 1>} : vector<1x14x1xi32>
    %c4_i32 = arith.constant 4 : i32
    %5 = vector.broadcast %c4_i32 : i32 to vector<1x14x1xi32>
    %6 = arith.cmpi slt, %4, %5 : vector<1x14x1xi32>
    %cst = arith.constant 1.500000e+00 : f32
    %cst_5 = arith.constant 5.000000e+00 : f32
    %7 = vector.broadcast %cst : f32 to vector<1x14x1xf32>
    %8 = vector.broadcast %cst_5 : f32 to vector<1x14x1xf32>
    %9 = arith.select %6, %7, %8 : vector<1x14x1xi1>, vector<1x14x1xf32>
    %10 = vector.broadcast %9 : vector<1x14x1xf32> to vector<1x14x16xf32>
    %11 = arith.mulf %3, %10 : vector<1x14x16xf32>
    %cst_6 = arith.constant dense<0.000000e+00> : vector<1x16xf32>
    %12 = vector.multi_reduction <add>, %11, %cst_6 [1] : vector<1x14x16xf32> to vector<1x16xf32>
    %13 = vector.shape_cast %12 : vector<1x16xf32> to vector<1x1x16xf32>
    %14 = vector.extract_strided_slice %0 {offsets = [0, 4, 0], sizes = [1, 2, 16], strides = [1, 1, 1]} : vector<1x14x16xf32> to vector<1x2x16xf32>
    %15 = vector.extract_strided_slice %0 {offsets = [0, 6, 0], sizes = [1, 2, 16], strides = [1, 1, 1]} : vector<1x14x16xf32> to vector<1x2x16xf32>
    %16 = vector.extract_strided_slice %1 {offsets = [0, 4, 0], sizes = [1, 2, 16], strides = [1, 1, 1]} : vector<1x14x16xf32> to vector<1x2x16xf32>
    %17 = vector.extract_strided_slice %1 {offsets = [0, 6, 0], sizes = [1, 2, 16], strides = [1, 1, 1]} : vector<1x14x16xf32> to vector<1x2x16xf32>
    %cst_7 = arith.constant 5.000000e-01 : f32
    %18 = vector.broadcast %cst_7 : f32 to vector<1x2x16xf32>
    %19 = arith.mulf %18, %15 : vector<1x2x16xf32>
    %20 = arith.subf %14, %19 : vector<1x2x16xf32>
    %cst_8 = arith.constant 5.000000e-01 : f32
    %21 = vector.broadcast %cst_8 : f32 to vector<1x2x16xf32>
    %22 = arith.mulf %21, %15 : vector<1x2x16xf32>
    %23 = arith.addf %14, %22 : vector<1x2x16xf32>
    %cst_9 = arith.constant 5.000000e-01 : f32
    %24 = vector.broadcast %cst_9 : f32 to vector<1x2x16xf32>
    %25 = arith.mulf %24, %17 : vector<1x2x16xf32>
    %26 = arith.subf %16, %25 : vector<1x2x16xf32>
    %cst_10 = arith.constant 5.000000e-01 : f32
    %27 = vector.broadcast %cst_10 : f32 to vector<1x2x16xf32>
    %28 = arith.mulf %27, %17 : vector<1x2x16xf32>
    %29 = arith.addf %16, %28 : vector<1x2x16xf32>
    %30 = arith.maximumf %26, %20 : vector<1x2x16xf32>
    %31 = arith.minimumf %26, %20 : vector<1x2x16xf32>
    %32 = arith.maximumf %29, %23 : vector<1x2x16xf32>
    %33 = arith.minimumf %29, %23 : vector<1x2x16xf32>
    %34 = vector.extract_strided_slice %30 {offsets = [0, 0, 0], sizes = [1, 1, 16], strides = [1, 1, 1]} : vector<1x2x16xf32> to vector<1x1x16xf32>
    %35 = vector.extract_strided_slice %31 {offsets = [0, 1, 0], sizes = [1, 1, 16], strides = [1, 1, 1]} : vector<1x2x16xf32> to vector<1x1x16xf32>
    %36 = vector.extract_strided_slice %32 {offsets = [0, 0, 0], sizes = [1, 1, 16], strides = [1, 1, 1]} : vector<1x2x16xf32> to vector<1x1x16xf32>
    %37 = vector.extract_strided_slice %33 {offsets = [0, 1, 0], sizes = [1, 1, 16], strides = [1, 1, 1]} : vector<1x2x16xf32> to vector<1x1x16xf32>
    %38 = vector.extract_strided_slice %15 {offsets = [0, 0, 0], sizes = [1, 1, 16], strides = [1, 1, 1]} : vector<1x2x16xf32> to vector<1x1x16xf32>
    %39 = vector.extract_strided_slice %15 {offsets = [0, 1, 0], sizes = [1, 1, 16], strides = [1, 1, 1]} : vector<1x2x16xf32> to vector<1x1x16xf32>
    %40 = arith.mulf %38, %39 : vector<1x1x16xf32>
    %41 = vector.extract_strided_slice %17 {offsets = [0, 0, 0], sizes = [1, 1, 16], strides = [1, 1, 1]} : vector<1x2x16xf32> to vector<1x1x16xf32>
    %42 = vector.extract_strided_slice %17 {offsets = [0, 1, 0], sizes = [1, 1, 16], strides = [1, 1, 1]} : vector<1x2x16xf32> to vector<1x1x16xf32>
    %43 = arith.mulf %41, %42 : vector<1x1x16xf32>
    %44 = arith.subf %36, %34 : vector<1x1x16xf32>
    %45 = arith.subf %35, %37 : vector<1x1x16xf32>
    %46 = arith.mulf %44, %45 : vector<1x1x16xf32>
    %47 = arith.addf %40, %43 : vector<1x1x16xf32>
    %48 = arith.subf %47, %46 : vector<1x1x16xf32>
    %49 = arith.divf %46, %48 : vector<1x1x16xf32>
    %50 = arith.addf %13, %49 : vector<1x1x16xf32>
    %cst_11 = arith.constant dense<0.000000e+00> : vector<1x1xf32>
    %51 = vector.multi_reduction <add>, %50, %cst_11 [2] : vector<1x1x16xf32> to vector<1x1xf32>
    %c0_12 = arith.constant 0 : index
    %c0_13 = arith.constant 0 : index
    %52 = vector.load %arg3[%c0_12, %c0_13] : memref<1x1xf32, #tpu.memory_space<vmem>>, vector<1x1xf32>
    tpu.vector_store %arg3[%c0_12, %c0_13], %51 {strides = array<i32>} : memref<1x1xf32, #tpu.memory_space<vmem>>, vector<1x1xf32>,
    return
  }
  func.func @transform_0(%arg0: i32) -> (i32, i32, i32) {
    %c0_i32 = arith.constant 0 : i32
    %c0_i32_0 = arith.constant 0 : i32
    %c0_i32_1 = arith.constant 0 : i32
    return %arg0, %c0_i32, %c0_i32_0 : i32, i32, i32
  }
  func.func @transform_1(%arg0: i32) -> (i32, i32, i32) {
    %c0_i32 = arith.constant 0 : i32
    %c0_i32_0 = arith.constant 0 : i32
    %c0_i32_1 = arith.constant 0 : i32
    return %arg0, %c0_i32, %c0_i32_0 : i32, i32, i32
  }
  func.func @transform_2(%arg0: i32) -> (i32, i32) {
    %c0_i32 = arith.constant 0 : i32
    %c0_i32_0 = arith.constant 0 : i32
    return %arg0, %c0_i32 : i32, i32
  }
}

</mosaic_0001>

<bundles_post_ra>
// kernel: tpu_custom_call.1
= control target key start
LH: loop header
LB: loop body
LE: loop exit
PB: predicated region body
PF: predicated region fallthrough
CT: control target
= control target key end

     0   :  { %v20_v3 = vlaneseq  ;;  %s160_s0 = inlined_call_operand.vmem [shape: f32[1,14,16], index: 0, kind: input, shape index: {}]   ;;  %s161_s1 = inlined_call_operand.vmem [shape: f32[1,14,16], index: 1, kind: input, shape index: {}]   ;;  %s162_s2 = inlined_call_operand.hbm [shape: f32[1,1], index: 2, kind: output, shape index: {}]  }
   0x1   :  { %v12_v0 = vld [vmem:[%s160_s0] sm:$0xff]  ;;  %v13_v1 = vld [vmem:[%s160_s0 + $0x8] sm:$0x3f] }
   0x2   :  { %v14_v2 = vld [vmem:[%s161_s1] sm:$0xff]  ;;  %v15_v4 = vld [vmem:[%s161_s1 + $0x8] sm:$0x3f]  ;;  %v40_v6 = vmul.f32 0.5, %v12_v0  ;;  %v21_v9 = vshrl.u32 %v20_v3, 7 }
   0x3   :  { %v16_v5 = vsub.f32 %v14_v2, %v12_v0  ;;  %v46_v7 = vmul.f32 0.5, %v14_v2  ;;  %v17_v8 = vsub.f32 %v15_v4, %v13_v1 }
   0x4   :  { %7 = vsyncpa [#allocation3], 0  ;;  %vm29_vm0 = vcmask 130048   ;;  %v42_v11 = vrot.slane %v40_v6, 2  ;;  %vm23_vm1 = vcmp.lt.s32.totalorder %v21_v9, 4  ;;  %vm31_vm2 = vcmask 128000  }
   0x5   :  { %v18_v10 = vmul.f32 %v16_v5, %v16_v5  ;;  %v48_v12 = vrot.slane %v46_v7, 2  ;;  %v19_v13 = vmul.f32 %v17_v8, %v17_v8  ;;  %v57_v14 = vrot.slane %v12_v0, 1  ;;  %s128_s0 = smov [#allocation2]  }
   0x6   :  { %v127_v15 = vmov 5.0   ;;  %v44_v17 = vsub.f32 %v12_v0, %v42_v11  ;;  %v45_v18 = vadd.f32 %v42_v11, %v12_v0  ;;  %v61_v23 = vrot.slane %v14_v2, 1  ;;  %s93_s1 = sshll.u32 %s128_s0, 4  ;;  %s94_s1 = int_to_ptr.vmem [resolvable:$true] %s93_s1 }
   0x7   :  { %v25_v16 = vsel %vm23_vm1, 1.5, %v127_v15  ;;  %v50_v19 = vsub.f32 %v14_v2, %v48_v12  ;;  %v28_v21 = vmul.f32 5.0, %v19_v13  ;;  %v51_v22 = vadd.f32 %v48_v12, %v14_v2  ;;  %s105_s17 = scalar_lea.vmem %s94_s1, 16  ;;  %s109_s18 = scalar_lea.vmem %s94_s1, 32 }
   0x8   :  { %v27_v20 = vmul.f32 %v25_v16, %v18_v10  ;;  %v59_v30 = vmul.f32 %v57_v14, %v12_v0  ;;  %v63_v32 = vmul.f32 %v61_v23, %v14_v2  ;;  %vm81_vm3 = vcmask 126980   ;;  %p106_p0 = scmp.ne.s32.totalorder %s94_s1, %s105_s17  ;;  %p110_p1 = scmp.lt.s32.totalorder %s94_s1, %s94_s1 }
   0x9   :  { %v52_v24 = vmax.f32 %v50_v19, %v44_v17  ;;  %v53_v25 = vmin.f32 %v50_v19, %v44_v17  ;;  %v32_v27 = vsel %vm31_vm2, %v28_v21, 0.0  ;;  %v54_v28 = vmax.f32 %v51_v22, %v45_v18  ;;  %p111_p2 = scmp.lt.s32.totalorder %s109_s18, %s105_s17 }
   0xa   :  { %v30_v26 = vsel %vm29_vm0, %v27_v20, 0.0  ;;  %v55_v29 = vmin.f32 %v51_v22, %v45_v18  ;;  %v70_v38 = vadd.f32 %v63_v32, %v59_v30  ;;  %vm85_vm4 = vcmask 4100  }
   0xb   :  { %v33_v31 = vadd.f32 %v32_v27, %v30_v26  ;;  %v64_v33 = vsub.f32 %v54_v28, %v52_v24  ;;  %p112_p3 = por %p111_p2, %p110_p1 }
   0xc   :  { %v65_v34 = vsub.f32 %v53_v25, %v55_v29 }
   0xd   :  { %v34_v36 = vrot.slane %v33_v31, 4  ;;  %p113_p4 = pnand %p112_p3, %p106_p0 }
   0xe   :  { %v67_v35 = vrot.slane %v65_v34, 1 }
   0xf   :  { %v35_v40 = vadd.f32 %v34_v36, %v33_v31 }
  0x10   :  { %v69_v37 = vmul.f32 %v67_v35, %v64_v33 }
  0x11   :  { %v36_v43 = vrot.slane %v35_v40, 2 }
  0x12   :  { %v72_v39 = vrot.slane %v69_v37, 6 }
  0x13   :  { %v37_v44 = vadd.f32 %v36_v43, %v35_v40 }
  0x14   :  { %v74_v41 = vsub.f32 %v70_v38, %v72_v39 }
  0x15   :  { %v38_v45 = vrot.slane %v37_v44, 1 }
  0x16   :  { %v76_v42 = vrot.slane %v74_v41, 2 }
  0x17   :  { %v39_v46 = vadd.f32 %v38_v45, %v37_v44 }
  0x18   :  { %103 = vrcp.f32 %v76_v42 }
  0x25   :  { %v104_v47 = vpop.eup %103 }
  0x26   :  { %v79_v48 = vmul.f32 %v104_v47, %v69_v37 }
  0x28   :  { %v80_v49 = vadd.f32 %v79_v48, %v39_v46 }
  0x2a   :  { %v82_v50 = vsel %vm81_vm3, %v80_v49, 0.0 }
  0x2b   :  { %83 = vadd.xlane.f32.xlu0 %v82_v50 }
  0xb4   :  { %v84_v51 = vpop.xlane.xlu0 %83 }
  0xb5   :  { %86 = vst.msk [vmem:[#allocation2 - $0x4] sm:$0x10] %vm85_vm4, %v84_v51 }
  0xb6   :  { %116 = shalt.err (!%p113_p4)
}
  0xb7   :  { %96 = dma.vmem_to_hbm [thread:$0]  %s94_s1, 16, %s162_s2, [#allocation3]  }
  0xb8   :  { %125 = dma.done.wait [#allocation3], 16  }
  0xb9   :  { %126 = vsyncadd [#allocation3], 4294967280 }
  0xba   :  { %100 = vsyncpa [#allocation3], 1 }

</bundles_post_ra>
